<compile_context>
chip_gen: v6e
topology: v6e:2x2x1
jax: 0.10.0
libtpu: 0.0.40
codegen_flags: <defaults>
</compile_context>

<pallas_src>
import jax
import jax.numpy as jnp
from jax.experimental import pallas as pl
from jax.experimental.pallas import tpu as pltpu


def _round_up(x: int, m: int) -> int:
    return ((x + m - 1) // m) * m


def _knightcap_kernel(x_ref, w_ref, b_ref, o_ref):
    # Single aligned matmul on the MXU; K is lane-aligned (multiple of 128).
    acc = jnp.dot(x_ref[...], w_ref[...], preferred_element_type=jnp.float32)
    # Scalar bias from SMEM broadcasts over the batch tile; tanh on f32 acc.
    o_ref[...] = jnp.tanh(acc + b_ref[0]).astype(o_ref.dtype)


def knightcap_forward(xg, xp, xs, w, b, *, block_b: int = 1024):
    """Pallas forward pass.

    Args:
      xg: (B, xg_size) float32
      xp: (B, xp_size) float32
      xs: (B, xs_size) float32
      w:  (1, xg_size + xp_size + xs_size) float32  (PyTorch Linear layout)
      b:  (1,) float32
      block_b: batch tile size (rows per pipeline step).
    Returns:
      (B, 1) float32
    """
    B = xg.shape[0]
    F = xg.shape[1] + xp.shape[1] + xs.shape[1]

    # Lane-align the contraction dim; tile + pad the batch dim.
    F_pad = _round_up(F, 128)
    TB = min(block_b, _round_up(B, 8))      # multiple of 8 (sublane tiling)
    B_pad = _round_up(B, TB)

    # Fuse the three feature groups once, then zero-pad to (B_pad, F_pad).
    # Zero rows/cols contribute nothing, so this is exactly concat + Linear.
    x = jnp.concatenate((xg, xp, xs), axis=1).astype(jnp.float32)
    x = jnp.pad(x, ((0, B_pad - B), (0, F_pad - F)))

    # Transposed, zero-padded weight: (F_pad, 1).
    wt = jnp.pad(jnp.transpose(w).astype(jnp.float32),
                 ((0, F_pad - F), (0, 0)))

    bias = b.reshape((1,)).astype(jnp.float32)

    grid = (B_pad // TB,)

    out = pl.pallas_call(
        _knightcap_kernel,
        out_shape=jax.ShapeDtypeStruct((B_pad, 1), jnp.float32),
        grid=grid,
        in_specs=[
            # Batch tile of the fused input, streamed + double-buffered.
            pl.BlockSpec((TB, F_pad), lambda i: (i, 0)),
            # Weight: same block every step -> stays resident in VMEM.
            pl.BlockSpec((F_pad, 1), lambda i: (0, 0)),
            # Bias scalar in SMEM (whole array, no blocking).
            pl.BlockSpec(memory_space=pltpu.MemorySpace.SMEM),
        ],
        out_specs=pl.BlockSpec((TB, 1), lambda i: (i, 0)),
        compiler_params=pltpu.CompilerParams(
            dimension_semantics=("parallel",),
        ),
    )(x, wt, bias)

    return out[:B]


def reference_forward(xg, xp, xs, w, b):
    """Pure-JAX reference matching the PyTorch module exactly."""
    x = jnp.concatenate((xg, xp, xs), axis=1)
    return jnp.tanh(x @ jnp.transpose(w) + b)


if __name__ == "__main__":
    # Small, deterministic problem: batch=2, xg=4, xp=8, xs=16.
    B, XG, XP, XS = 2, 4, 8, 16
    key = jax.random.PRNGKey(0)
    k_xg, k_xp, k_xs, k_w, k_b = jax.random.split(key, 5)

    xg = jax.random.normal(k_xg, (B, XG), dtype=jnp.float32)
    xp = jax.random.normal(k_xp, (B, XP), dtype=jnp.float32)
    xs = jax.random.normal(k_xs, (B, XS), dtype=jnp.float32)

    # Deterministic "parameters" (same shapes as nn.Linear(XG+XP+XS, 1)).
    F = XG + XP + XS
    bound = 1.0 / jnp.sqrt(jnp.float32(F))
    w = jax.random.uniform(k_w, (1, F), minval=-bound, maxval=bound,
                           dtype=jnp.float32)
    b = jax.random.uniform(k_b, (1,), minval=-bound, maxval=bound,
                           dtype=jnp.float32)

    out = knightcap_forward(xg, xp, xs, w, b)
    out = jax.block_until_ready(out)

    ref = reference_forward(xg, xp, xs, w, b)
    assert out.shape == (B, 1), out.shape
    assert jnp.allclose(out, ref, atol=1e-5, rtol=1e-5), (out, ref)

    print("KERNEL_OK")
</pallas_src>

<mosaic_0001>
module attributes {stable_mosaic.version = 11 : i64} {
  func.func @_knightcap_kernel(%arg0: i32, %arg1: memref<8x128xf32, #tpu.memory_space<vmem>>, %arg2: memref<128x1xf32, #tpu.memory_space<vmem>>, %arg3: memref<1xf32, #tpu.memory_space<smem>>, %arg4: memref<8x1xf32, #tpu.memory_space<vmem>>) attributes {dimension_semantics = [#tpu.dimension_semantics<parallel>], iteration_bounds = array<i64: 1>, scalar_prefetch = 0 : i64, scratch_operands = 0 : i64, tpu.core_type = #tpu.core_type<tc>, window_params = [{transform_indices = @transform_0, window_bounds = array<i64: 8, 128>}, {pipeline_mode = #tpu.pipeline_mode<synchronous>, transform_indices = @transform_1, window_bounds = array<i64: 128, 1>}, {transform_indices = @transform_2, window_bounds = array<i64: 1>}, {transform_indices = @transform_3, window_bounds = array<i64: 8, 1>}]} {
    %c0 = arith.constant 0 : index
    %c0_0 = arith.constant 0 : index
    %0 = vector.load %arg1[%c0, %c0_0] : memref<8x128xf32, #tpu.memory_space<vmem>>, vector<8x128xf32>
    %c0_1 = arith.constant 0 : index
    %c0_2 = arith.constant 0 : index
    %1 = vector.load %arg2[%c0_1, %c0_2] : memref<128x1xf32, #tpu.memory_space<vmem>>, vector<128x1xf32>
    %cst = arith.constant dense<0.000000e+00> : vector<8x1xf32>
    %2 = tpu.matmul %0, %1, %cst {dimension_numbers = #tpu.dot_dimension_numbers<[1], [0], [0], [1], [0, 0, 1, 1], [], []>} : vector<8x128xf32>, vector<128x1xf32>, vector<8x1xf32> -> vector<8x1xf32>
    %c0_3 = arith.constant 0 : index
    %3 = memref.load %arg3[%c0_3] : memref<1xf32, #tpu.memory_space<smem>>
    %4 = vector.broadcast %3 : f32 to vector<8x1xf32>
    %5 = arith.addf %2, %4 : vector<8x1xf32>
    %6 = math.tanh %5 : vector<8x1xf32>
    %c0_4 = arith.constant 0 : index
    %c0_5 = arith.constant 0 : index
    %7 = vector.load %arg4[%c0_4, %c0_5] : memref<8x1xf32, #tpu.memory_space<vmem>>, vector<8x1xf32>
    tpu.vector_store %arg4[%c0_4, %c0_5], %6 {strides = array<i32>} : memref<8x1xf32, #tpu.memory_space<vmem>>, vector<8x1xf32>,
    return
  }
  func.func @transform_0(%arg0: i32) -> (i32, i32) {
    %c0_i32 = arith.constant 0 : i32
    %c0_i32_0 = arith.constant 0 : i32
    return %arg0, %c0_i32 : i32, i32
  }
  func.func @transform_1(%arg0: i32) -> (i32, i32) {
    %c0_i32 = arith.constant 0 : i32
    %c0_i32_0 = arith.constant 0 : i32
    %c0_i32_1 = arith.constant 0 : i32
    return %c0_i32, %c0_i32_0 : i32, i32
  }
  func.func @transform_2(%arg0: i32) -> i32 {
    %c0_i32 = arith.constant 0 : i32
    %c0_i32_0 = arith.constant 0 : i32
    return %c0_i32 : i32
  }
  func.func @transform_3(%arg0: i32) -> (i32, i32) {
    %c0_i32 = arith.constant 0 : i32
    %c0_i32_0 = arith.constant 0 : i32
    return %arg0, %c0_i32 : i32, i32
  }
}

</mosaic_0001>

<bundles_post_ra>
// kernel: tpu_custom_call.1
= control target key start
LH: loop header
LB: loop body
LE: loop exit
PB: predicated region body
PF: predicated region fallthrough
CT: control target
= control target key end

     0   :  { %v167_v0 = vmov 0.0   ;;  %vm168_vm0 = vmmov 0   ;;  %vm105_vm1 = vcmask 7168   ;;  %s246_s1 = inlined_call_operand.vmem [shape: f32[128,1], index: 1, kind: input, shape index: {}]   ;;  %s247_s0 = inlined_call_operand.vmem [shape: f32[8,128], index: 0, kind: input, shape index: {}]   ;;  %s248_s2 = inlined_call_operand.<no memory space> [shape: f32[1], index: 2, kind: input, shape index: {}]   ;;  %s249_s3 = inlined_call_operand.vmem [shape: f32[8,1], index: 3, kind: output, shape index: {}]  }
   0x1   :  { %128 = vmatprep.subr.mxu0 %v167_v0  ;;  %v31_v1 = vld [vmem:[%s246_s1 + $0x78] sm:$0xff]  ;;  %v30_v2 = vld [vmem:[%s246_s1 + $0x70] sm:$0xff]  ;;  %160 = vmatprep.mubr.msk.f32.mxu0 %vm168_vm0, %v167_v0  ;;  %v29_v3 = vld [vmem:[%s246_s1 + $0x68] sm:$0xff]  ;;  %v33_v18 = vstv %s248_s2 }
   0x2   :  { %129 = vmatpush3.msra.mxu0 %v31_v1  ;;  %v28_v4 = vld [vmem:[%s246_s1 + $0x60] sm:$0xff]  ;;  %v27_v5 = vld [vmem:[%s246_s1 + $0x58] sm:$0xff]  ;;  %v26_v6 = vld [vmem:[%s246_s1 + $0x50] sm:$0xff] }
   0x3   :  { %130 = vmatprep.subr.mxu0 %v167_v0  ;;  %v25_v7 = vld [vmem:[%s246_s1 + $0x48] sm:$0xff]  ;;  %v24_v8 = vld [vmem:[%s246_s1 + $0x40] sm:$0xff]  ;;  %v23_v9 = vld [vmem:[%s246_s1 + $0x38] sm:$0xff] }
   0x4   :  { %131 = vmatpush3.msra.mxu0 %v30_v2  ;;  %v22_v10 = vld [vmem:[%s246_s1 + $0x30] sm:$0xff]  ;;  %v21_v11 = vld [vmem:[%s246_s1 + $0x28] sm:$0xff]  ;;  %v20_v12 = vld [vmem:[%s246_s1 + $0x20] sm:$0xff] }
   0x5   :  { %132 = vmatprep.subr.mxu0 %v167_v0  ;;  %v19_v13 = vld [vmem:[%s246_s1 + $0x18] sm:$0xff]  ;;  %v18_v14 = vld [vmem:[%s246_s1 + $0x10] sm:$0xff]  ;;  %v17_v15 = vld [vmem:[%s246_s1 + $0x8] sm:$0xff] }
   0x6   :  { %133 = vmatpush3.msra.mxu0 %v29_v3  ;;  %v16_v16 = vld [vmem:[%s246_s1] sm:$0xff] }
   0x7   :  { %134 = vmatprep.subr.mxu0 %v167_v0  ;;  %v15_v17 = vld [vmem:[%s247_s0] sm:$0xff] }
   0x8   :  { %135 = vmatpush3.msra.mxu0 %v28_v4 }
   0x9   :  { %136 = vmatprep.subr.mxu0 %v167_v0 }
   0xa   :  { %137 = vmatpush3.msra.mxu0 %v27_v5 }
   0xb   :  { %138 = vmatprep.subr.mxu0 %v167_v0 }
   0xc   :  { %139 = vmatpush3.msra.mxu0 %v26_v6 }
   0xd   :  { %140 = vmatprep.subr.mxu0 %v167_v0 }
   0xe   :  { %141 = vmatpush3.msra.mxu0 %v25_v7 }
   0xf   :  { %142 = vmatprep.subr.mxu0 %v167_v0 }
  0x10   :  { %143 = vmatpush3.msra.mxu0 %v24_v8 }
  0x11   :  { %144 = vmatprep.subr.mxu0 %v167_v0 }
  0x12   :  { %145 = vmatpush3.msra.mxu0 %v23_v9 }
  0x13   :  { %146 = vmatprep.subr.mxu0 %v167_v0 }
  0x14   :  { %147 = vmatpush3.msra.mxu0 %v22_v10 }
  0x15   :  { %148 = vmatprep.subr.mxu0 %v167_v0 }
  0x16   :  { %149 = vmatpush3.msra.mxu0 %v21_v11 }
  0x17   :  { %150 = vmatprep.subr.mxu0 %v167_v0 }
  0x18   :  { %151 = vmatpush3.msra.mxu0 %v20_v12 }
  0x19   :  { %152 = vmatprep.subr.mxu0 %v167_v0 }
  0x1a   :  { %153 = vmatpush3.msra.mxu0 %v19_v13 }
  0x1b   :  { %154 = vmatprep.subr.mxu0 %v167_v0 }
  0x1c   :  { %155 = vmatpush3.msra.mxu0 %v18_v14 }
  0x1d   :  { %156 = vmatprep.subr.mxu0 %v167_v0 }
  0x1e   :  { %157 = vmatpush3.msra.mxu0 %v17_v15 }
  0x1f   :  { %158 = vmatprep.subr.mxu0 %v167_v0 }
  0x20   :  { %159 = vmatpush3.msra.mxu0 %v16_v16 }
  0x21   :  { %161 = vmatmul.mubr.f32.vlgmr.msra.gmra.mxu0 %v15_v17 }
  0xe1   :  { %v100_v19 = vpop.f32.mrf.mxu0 }
  0xe2   :  { %v101_v20 = vadd.f32 %v100_v19, %v33_v18 }
  0xe3   :  { %v162_v21 = vpop.f32.mrf.mxu0 }
  0xe4   :  { %165 = vtanh.f32 %v101_v20 }
  0xf1   :  { %v166_v22 = vpop.eup %165 }
  0xf2   :  { %106 = vst.msk [vmem:[%s249_s3] sm:$0xff] %vm105_vm1, %v166_v22 }

</bundles_post_ra>
